<compile_context>
chip_gen: v7x
topology: tpu7x:2x2x1
jax: 0.10.0
libtpu: 0.0.40
codegen_flags: <defaults>
</compile_context>

<pallas_src>
import functools

import jax
import jax.numpy as jnp
from jax.experimental import pallas as pl
from jax.experimental.pallas import tpu as pltpu

LANE = 128      # vreg lane width (last dim)
SUBLANE = 8     # f32 sublane width (second-to-last dim)
VMEM_BUDGET = 48 << 20   # per-TensorCore budget, safe for v7x (64 MiB physical)


def _round_up(x, m):
    return ((x + m - 1) // m) * m


def mlp_kernel(x_ref, w1_ref, b1_ref, w2_ref, b2_ref, o_ref, acc_ref):
    """grid = (batch_tiles, k_tiles); k (reduction) is the last, 'arbitrary' axis."""
    k = pl.program_id(1)

    @pl.when(k == 0)
    def _init():
        acc_ref[...] = jnp.zeros_like(acc_ref)

    # l1 partial product over this K tile: bf16 x bf16 on the MXU, f32 accumulate.
    acc_ref[...] += jnp.dot(
        x_ref[...].astype(jnp.bfloat16), w1_ref[...],
        preferred_element_type=jnp.float32)

    @pl.when(k == pl.num_programs(1) - 1)
    def _finalize():
        # bias add + ReLU in f32, then l2 on the MXU, bf16 store (half the
        # output HBM traffic; upcast happens outside after the batch slice).
        h = jnp.maximum(acc_ref[...] + b1_ref[...], 0.0)
        out = jnp.dot(h.astype(jnp.bfloat16), w2_ref[...],
                      preferred_element_type=jnp.float32)
        o_ref[...] = (out + b2_ref[...]).astype(o_ref.dtype)


def prepare_params(w1, b1, w2, b2):
    """One-time (per weight update) prep — call ONCE, not per forward.

    Casts weights to bf16 for the MXU and keeps biases in f32 as (1, n) rows
    (added post-accumulation). Hoisting this out of the forward removes the
    per-call HBM pad/convert traffic on the weight matrices.
    """
    return (jnp.asarray(w1, jnp.bfloat16),
            jnp.asarray(b1, jnp.float32).reshape(1, -1),
            jnp.asarray(w2, jnp.bfloat16),
            jnp.asarray(b2, jnp.float32).reshape(1, -1))


@functools.partial(jax.jit, static_argnames=("block_b",))
def neural_net_forward(x, w1, b1, w2, b2, *, block_b=1024):
    """Forward pass of NeuralNet: Linear -> ReLU -> Linear.

    x : (B, K)  f32
    w1: (K, H)  bf16 (transposed vs. PyTorch; see prepare_params)
    b1: (1, H)  f32
    w2: (H, C)  bf16
    b2: (1, C)  f32
    Returns (B, C) f32 logits.
    """
    B, K = x.shape
    H = w1.shape[1]
    C = w2.shape[1]

    # Defensive no-op casts: if the caller used prepare_params these are elided
    # at trace time (same-dtype convert is removed); otherwise they fall back
    # to a per-call cast.
    w1 = w1.astype(jnp.bfloat16)
    w2 = w2.astype(jnp.bfloat16)
    b1 = jnp.asarray(b1, jnp.float32).reshape(1, -1)
    b2 = jnp.asarray(b2, jnp.float32).reshape(1, -1)

    # ---- batch tiling --------------------------------------------------
    B8 = _round_up(B, SUBLANE)
    tb = min(_round_up(max(block_b, SUBLANE), SUBLANE), B8)   # force 8-multiple
    nb = pl.cdiv(B8, tb)
    if nb < 2 and B8 >= 2 * SUBLANE:
        nb = 2                      # give both v7x TensorCores a tile
    tb = _round_up(pl.cdiv(B8, nb), SUBLANE)   # balanced tiles, small overhang
    Bp = nb * tb

    # ---- VMEM budget / K (contraction) tiling --------------------------
    Hl = _round_up(H, LANE)
    Cl = _round_up(C, LANE)

    def vmem_needed(tk_):
        tkl = _round_up(tk_, LANE)
        return (2 * tb * tkl * 4          # x blocks   (f32, double-buffered)
                + 2 * tk_ * Hl * 2        # w1 blocks  (bf16)
                + 2 * Hl * Cl * 2         # w2         (bf16, budget 2 buffers)
                + 2 * 8 * (Hl + Cl) * 4   # biases     (f32, sublane-padded)
                + 2 * tb * Cl * 2         # out blocks (bf16)
                + tb * Hl * 4)            # f32 accumulator scratch

    tk = K
    if vmem_needed(K) > VMEM_BUDGET and K % LANE == 0:
        for cand in (2048, 1024, 512, 256, LANE):
            if K % cand == 0:
                tk = cand
                if vmem_needed(cand) <= VMEM_BUDGET:
                    break
        # TODO(synk): if even tk=128 exceeds the budget (very large H*C), w2
        # also needs tiling over H/C with a second accumulation stage.
    nk = K // tk if K % tk == 0 else 1
    if nk == 1:
        tk = K

    vmem_limit = int(min(max(vmem_needed(tk) * 5 // 4, 32 << 20), 56 << 20))

    # Pad only the batch remainder (rare: B already a tile multiple in the
    # common case, so x normally goes to the kernel untouched).
    if Bp != B:
        x_in = jnp.zeros((Bp, K), x.dtype).at[:B, :].set(x)
    else:
        x_in = x

    grid = (nb, nk)

    flops = 2 * Bp * (K * H + H * C)
    bytes_accessed = (Bp * K * 4 + K * H * 2 + H * C * 2
                      + (H + C) * 4 + Bp * C * 2)

    out = pl.pallas_call(
        mlp_kernel,
        out_shape=jax.ShapeDtypeStruct((Bp, C), jnp.bfloat16),
        grid=grid,
        in_specs=[
            # x: streamed per (batch, K) tile; double-buffered by the pipeline.
            pl.BlockSpec((tb, tk), lambda i, k: (i, k)),
            # w1: tiled along K only (resident when nk == 1).
            pl.BlockSpec((tk, H), lambda i, k: (k, 0)),
            pl.BlockSpec((1, H), lambda i, k: (0, 0)),
            # w2 / b2: constant block index -> VMEM-resident across the grid.
            pl.BlockSpec((H, C), lambda i, k: (0, 0)),
            pl.BlockSpec((1, C), lambda i, k: (0, 0)),
        ],
        out_specs=pl.BlockSpec((tb, C), lambda i, k: (i, 0)),
        scratch_shapes=[pltpu.VMEM((tb, H), jnp.float32)],
        compiler_params=pltpu.CompilerParams(
            # batch tiles independent -> shard across v7x's 2 TCs; K is the
            # reduction axis (accumulator carried in scratch).
            dimension_semantics=("parallel", "arbitrary"),
            vmem_limit_bytes=vmem_limit,
        ),
        cost_estimate=pl.CostEstimate(
            flops=flops, transcendentals=0, bytes_accessed=bytes_accessed),
    )(x_in, w1, b1, w2, b2)

    # Slice away batch padding; upcast to f32 only here (after the cheap slice).
    return out[:B, :].astype(jnp.float32)


def init_linear_params(key, in_features, out_features, dtype=jnp.float32):
    """Deterministic init mimicking torch.nn.Linear default (U(-k, k), k=1/sqrt(fan_in))."""
    k = 1.0 / jnp.sqrt(jnp.asarray(in_features, dtype))
    kw, kb = jax.random.split(key)
    # Stored transposed: (in_features, out_features)
    w = jax.random.uniform(kw, (in_features, out_features), dtype, -k, k)
    b = jax.random.uniform(kb, (1, out_features), dtype, -k, k)
    return w, b


if __name__ == "__main__":
    input_size = 64
    hidden_size = 32
    num_classes = 16
    batch = 8

    key = jax.random.PRNGKey(0)
    kx, k1, k2 = jax.random.split(key, 3)

    x = jax.random.normal(kx, (batch, input_size), jnp.float32)
    w1, b1 = init_linear_params(k1, input_size, hidden_size)
    w2, b2 = init_linear_params(k2, hidden_size, num_classes)

    # Hoisted one-time weight prep (bf16 cast) -- NOT done per forward call.
    params = prepare_params(w1, b1, w2, b2)

    out = neural_net_forward(x, *params)
    out = jax.block_until_ready(out)
    assert out.shape == (batch, num_classes)

    # Reference with the SAME bf16-input / f32-accumulate / bf16-store math
    # (tight tolerance), plus a loose check vs. the pure-f32 PyTorch math.
    h_ref = jnp.dot(x.astype(jnp.bfloat16), w1.astype(jnp.bfloat16),
                    preferred_element_type=jnp.float32) + b1
    h_ref = jnp.maximum(h_ref, 0.0)
    ref_bf16 = jnp.dot(h_ref.astype(jnp.bfloat16), w2.astype(jnp.bfloat16),
                       preferred_element_type=jnp.float32) + b2
    ref_bf16 = ref_bf16.astype(jnp.bfloat16).astype(jnp.float32)
    ref_f32 = jnp.maximum(x @ w1 + b1, 0.0) @ w2 + b2

    assert jnp.allclose(out, ref_bf16, atol=1e-2, rtol=1e-2)
    assert jnp.allclose(out, ref_f32, atol=5e-2, rtol=5e-2)

    print("KERNEL_OK")
</pallas_src>

<mosaic_0001>
module attributes {stable_mosaic.version = 11 : i64} {
  func.func @mlp_kernel(%arg0: i32, %arg1: i32, %arg2: memref<8x64xf32, #tpu.memory_space<vmem>>, %arg3: memref<64x32xbf16, #tpu.memory_space<vmem>>, %arg4: memref<1x32xf32, #tpu.memory_space<vmem>>, %arg5: memref<32x16xbf16, #tpu.memory_space<vmem>>, %arg6: memref<1x16xf32, #tpu.memory_space<vmem>>, %arg7: memref<8x16xbf16, #tpu.memory_space<vmem>>, %arg8: memref<8x32xf32, #tpu.memory_space<vmem>>) attributes {dimension_semantics = [#tpu.dimension_semantics<parallel>, #tpu.dimension_semantics<arbitrary>], iteration_bounds = array<i64: 1, 1>, scalar_prefetch = 0 : i64, scratch_operands = 1 : i64, tpu.core_type = #tpu.core_type<tc>, window_params = [{transform_indices = @transform_0, window_bounds = array<i64: 8, 64>}, {transform_indices = @transform_1, window_bounds = array<i64: 64, 32>}, {pipeline_mode = #tpu.pipeline_mode<synchronous>, transform_indices = @transform_2, window_bounds = array<i64: 1, 32>}, {pipeline_mode = #tpu.pipeline_mode<synchronous>, transform_indices = @transform_3, window_bounds = array<i64: 32, 16>}, {pipeline_mode = #tpu.pipeline_mode<synchronous>, transform_indices = @transform_4, window_bounds = array<i64: 1, 16>}, {transform_indices = @transform_5, window_bounds = array<i64: 8, 16>}]} {
    %c0_i32 = arith.constant 0 : i32
    %0 = arith.cmpi eq, %arg1, %c0_i32 : i32
    %1 = arith.extui %0 : i1 to i32
    %c0_i32_0 = arith.constant 0 : i32
    %2 = arith.cmpi ne, %1, %c0_i32_0 : i32
    scf.if %2 {
      %cst_10 = arith.constant 0.000000e+00 : f32
      %13 = vector.broadcast %cst_10 : f32 to vector<8x32xf32>
      %c0_11 = arith.constant 0 : index
      %c0_12 = arith.constant 0 : index
      %14 = vector.load %arg8[%c0_11, %c0_12] : memref<8x32xf32, #tpu.memory_space<vmem>>, vector<8x32xf32>
      tpu.vector_store %arg8[%c0_11, %c0_12], %13 {strides = array<i32>} : memref<8x32xf32, #tpu.memory_space<vmem>>, vector<8x32xf32>,
    } else {
    }
    %c0 = arith.constant 0 : index
    %c0_1 = arith.constant 0 : index
    %3 = vector.load %arg8[%c0, %c0_1] : memref<8x32xf32, #tpu.memory_space<vmem>>, vector<8x32xf32>
    %c0_2 = arith.constant 0 : index
    %c0_3 = arith.constant 0 : index
    %4 = vector.load %arg2[%c0_2, %c0_3] : memref<8x64xf32, #tpu.memory_space<vmem>>, vector<8x64xf32>
    %5 = arith.truncf %4 : vector<8x64xf32> to vector<8x64xbf16>
    %c0_4 = arith.constant 0 : index
    %c0_5 = arith.constant 0 : index
    %6 = vector.load %arg3[%c0_4, %c0_5] : memref<64x32xbf16, #tpu.memory_space<vmem>>, vector<64x32xbf16>
    %cst = arith.constant dense<0.000000e+00> : vector<8x32xf32>
    %7 = tpu.matmul %5, %6, %cst {dimension_numbers = #tpu.dot_dimension_numbers<[1], [0], [0], [1], [0, 0, 1, 1], [], []>} : vector<8x64xbf16>, vector<64x32xbf16>, vector<8x32xf32> -> vector<8x32xf32>
    %8 = arith.addf %3, %7 : vector<8x32xf32>
    %c0_6 = arith.constant 0 : index
    %c0_7 = arith.constant 0 : index
    %9 = vector.load %arg8[%c0_6, %c0_7] : memref<8x32xf32, #tpu.memory_space<vmem>>, vector<8x32xf32>
    tpu.vector_store %arg8[%c0_6, %c0_7], %8 {strides = array<i32>} : memref<8x32xf32, #tpu.memory_space<vmem>>, vector<8x32xf32>,
    %c0_i32_8 = arith.constant 0 : i32
    %10 = arith.cmpi eq, %arg1, %c0_i32_8 : i32
    %11 = arith.extui %10 : i1 to i32
    %c0_i32_9 = arith.constant 0 : i32
    %12 = arith.cmpi ne, %11, %c0_i32_9 : i32
    scf.if %12 {
      %c0_10 = arith.constant 0 : index
      %c0_11 = arith.constant 0 : index
      %13 = vector.load %arg8[%c0_10, %c0_11] : memref<8x32xf32, #tpu.memory_space<vmem>>, vector<8x32xf32>
      %c0_12 = arith.constant 0 : index
      %c0_13 = arith.constant 0 : index
      %14 = vector.load %arg4[%c0_12, %c0_13] : memref<1x32xf32, #tpu.memory_space<vmem>>, vector<1x32xf32>
      %15 = vector.broadcast %14 : vector<1x32xf32> to vector<8x32xf32>
      %16 = arith.addf %13, %15 : vector<8x32xf32>
      %cst_14 = arith.constant 0.000000e+00 : f32
      %17 = vector.broadcast %cst_14 : f32 to vector<8x32xf32>
      %18 = arith.maximumf %16, %17 : vector<8x32xf32>
      %19 = arith.truncf %18 : vector<8x32xf32> to vector<8x32xbf16>
      %c0_15 = arith.constant 0 : index
      %c0_16 = arith.constant 0 : index
      %20 = vector.load %arg5[%c0_15, %c0_16] : memref<32x16xbf16, #tpu.memory_space<vmem>>, vector<32x16xbf16>
      %cst_17 = arith.constant dense<0.000000e+00> : vector<8x16xf32>
      %21 = tpu.matmul %19, %20, %cst_17 {dimension_numbers = #tpu.dot_dimension_numbers<[1], [0], [0], [1], [0, 0, 1, 1], [], []>} : vector<8x32xbf16>, vector<32x16xbf16>, vector<8x16xf32> -> vector<8x16xf32>
      %c0_18 = arith.constant 0 : index
      %c0_19 = arith.constant 0 : index
      %22 = vector.load %arg6[%c0_18, %c0_19] : memref<1x16xf32, #tpu.memory_space<vmem>>, vector<1x16xf32>
      %23 = vector.broadcast %22 : vector<1x16xf32> to vector<8x16xf32>
      %24 = arith.addf %21, %23 : vector<8x16xf32>
      %25 = arith.truncf %24 : vector<8x16xf32> to vector<8x16xbf16>
      %c0_20 = arith.constant 0 : index
      %c0_21 = arith.constant 0 : index
      %26 = vector.load %arg7[%c0_20, %c0_21] : memref<8x16xbf16, #tpu.memory_space<vmem>>, vector<8x16xbf16>
      tpu.vector_store %arg7[%c0_20, %c0_21], %25 {strides = array<i32>} : memref<8x16xbf16, #tpu.memory_space<vmem>>, vector<8x16xbf16>,
    } else {
    }
    return
  }
  func.func @transform_0(%arg0: i32, %arg1: i32) -> (i32, i32) {
    %c0_i32 = arith.constant 0 : i32
    return %arg0, %arg1 : i32, i32
  }
  func.func @transform_1(%arg0: i32, %arg1: i32) -> (i32, i32) {
    %c0_i32 = arith.constant 0 : i32
    %c0_i32_0 = arith.constant 0 : i32
    return %arg1, %c0_i32 : i32, i32
  }
  func.func @transform_2(%arg0: i32, %arg1: i32) -> (i32, i32) {
    %c0_i32 = arith.constant 0 : i32
    %c0_i32_0 = arith.constant 0 : i32
    %c0_i32_1 = arith.constant 0 : i32
    return %c0_i32, %c0_i32_0 : i32, i32
  }
  func.func @transform_3(%arg0: i32, %arg1: i32) -> (i32, i32) {
    %c0_i32 = arith.constant 0 : i32
    %c0_i32_0 = arith.constant 0 : i32
    %c0_i32_1 = arith.constant 0 : i32
    return %c0_i32, %c0_i32_0 : i32, i32
  }
  func.func @transform_4(%arg0: i32, %arg1: i32) -> (i32, i32) {
    %c0_i32 = arith.constant 0 : i32
    %c0_i32_0 = arith.constant 0 : i32
    %c0_i32_1 = arith.constant 0 : i32
    return %c0_i32, %c0_i32_0 : i32, i32
  }
  func.func @transform_5(%arg0: i32, %arg1: i32) -> (i32, i32) {
    %c0_i32 = arith.constant 0 : i32
    %c0_i32_0 = arith.constant 0 : i32
    return %arg0, %c0_i32 : i32, i32
  }
}

</mosaic_0001>

<bundles_post_ra>
// kernel: neural_net_forward.1
= control target key start
LH: loop header
LB: loop body
LE: loop exit
PB: predicated region body
PF: predicated region fallthrough
CT: control target
= control target key end

     0   :  { %vm25_vm0 = vcmask 261120   ;;  %v242_v0 = vmov 0.0   ;;  %vm243_vm1 = vmmov 0   ;;  %vm62_vm2 = vcmask 523264   ;;  %s307_s1 = inlined_call_operand.vmem [shape: bf16[64,32], index: 1, kind: input, shape index: {}]   ;;  %s308_s0 = inlined_call_operand.vmem [shape: f32[8,64], index: 0, kind: input, shape index: {}]   ;;  %s309_s3 = inlined_call_operand.vmem [shape: bf16[32,16], index: 3, kind: input, shape index: {}]   ;;  %s310_s2 = inlined_call_operand.vmem [shape: f32[1,32], index: 2, kind: input, shape index: {}]   ;;  %s311_s4 = inlined_call_operand.vmem [shape: f32[1,16], index: 4, kind: input, shape index: {}]   ;;  %s312_s5 = inlined_call_operand.vmem [shape: bf16[8,16], index: 5, kind: output, shape index: {}]  }
   0x1   :  { %214 = vmatprep.subr.bf16.mxu0 %v242_v0  ;;  %v236_v1 = vld [vmem:[%s307_s1] sm:$0xff]   ;;  %222 = vmatprep.mubr.msk.bf16.mxu0 %vm243_vm1, %v242_v0  ;;  %26 = vst.msk [vmem:[#allocation2] sm:$0xff] %vm25_vm0, %v242_v0  ;;  %v237_v2 = vld [vmem:[%s307_s1 + $0x8] sm:$0xff]   ;;  %v238_v3 = vld [vmem:[%s307_s1 + $0x10] sm:$0xff]   ;;  %vm190_vm3 = vcmask 125952  }
   0x2   :  { %226 = vmatprep.subr.bf16.mxu1 %v242_v0  ;;  %230 = vmatprep.mubr.msk.bf16.mxu1 %vm243_vm1, %v242_v0  ;;  %v239_v4 = vld [vmem:[%s307_s1 + $0x18] sm:$0xff]   ;;  %v28_v5 = vld [vmem:[%s308_s0] sm:$0xff]  ;;  %v241_v8 = vld [vmem:[%s309_s3 + $0x8] sm:$0xff]  }
   0x3   :  { %215 = vmatpush3.bf16.msra.mxu0 %v236_v1  ;;  %v29_v6 = vpack.c.bf16 %v28_v5, %v28_v5  ;;  %v240_v7 = vld [vmem:[%s309_s3] sm:$0xff]  }
   0x4   :  { %216 = vmatprep.subr.bf16.mxu0 %v242_v0  ;;  %227 = vmatpush3.bf16.msra.mxu1 %v240_v7  ;;  %v201_v15 = vld [vmem:[%s310_s2] ss:$0 sm:$0xff] }
   0x5   :  { %228 = vmatprep.subr.bf16.mxu1 %v242_v0  ;;  %v202_v20 = vld [vmem:[%s311_s4] ss:$0 sm:$0xff] }
   0x7   :  { %217 = vmatpush3.bf16.msra.mxu0 %v237_v2 }
   0x8   :  { %218 = vmatprep.subr.bf16.mxu0 %v242_v0  ;;  %229 = vmatpush3.bf16.msra.mxu1 %v241_v8  ;;  %v27_v9 = vld [vmem:[#allocation2] sm:$0xff] }
   0xb   :  { %219 = vmatpush3.bf16.msra.mxu0 %v238_v3 }
   0xc   :  { %220 = vmatprep.subr.bf16.mxu0 %v242_v0 }
   0xf   :  { %221 = vmatpush3.bf16.msra.mxu0 %v239_v4 }
  0x12   :  { %223 = vmatmul.mubr.msk.bf16.vlgmr.msra.gmra.mrb[0].mxu0 %vm62_vm2, %v29_v6 }
  0xe5   :  { %v100_v10 = vpop.f32.mrb[0].mxu0 }
  0xe6   :  { %v106_v11 = vadd.f32 %v100_v10, %v27_v9  ;;  %v224_v12 = vpop.f32.mrb[1].mxu0 }
  0xe7   :  { %v103_v13 = vpop.f32.mrb[2].mxu0 }
  0xe8   :  { %108 = vst.msk [vmem:[#allocation2] sm:$0xff] %vm25_vm0, %v106_v11  ;;  %v225_v14 = vpop.f32.mrb[3].mxu0 }
  0xef   :  { %v112_v16 = vld [vmem:[#allocation2] sm:$0xff] }
  0xf0   :  { %v120_v17 = vadd.f32 %v201_v15, %v112_v16 }
  0xf2   :  { %v121_v18 = vmax.f32 %v120_v17, 0.0 }
  0xf4   :  { %v122_v19 = vpack.c.bf16 %v121_v18, %v121_v18 }
  0xf6   :  { %231 = vmatmul.mubr.msk.bf16.vlgmr.msra.gmra.mrb[0].mxu1 %vm25_vm0, %v122_v19 }
 0x1c9   :  { %v183_v21 = vpop.f32.mrb[0].mxu1 }
 0x1ca   :  { %v184_v22 = vadd.f32 %v202_v20, %v183_v21  ;;  %v232_v23 = vpop.f32.mrb[1].mxu1 }
 0x1cb   :  { %v186_v24 = vpop.f32.mrb[2].mxu1 }
 0x1cc   :  { %v189_v25 = vpack.c.bf16 %v184_v22, %v184_v22  ;;  %v233_v26 = vpop.f32.mrb[3].mxu1 }
 0x1ce   :  { %191 = vst.msk [vmem:[%s312_s5] sm:$0xf] %vm190_vm3, %v189_v25 }

</bundles_post_ra>
